<compile_context>
chip_gen: v7x
topology: tpu7x:2x2x1
jax: 0.10.0
libtpu: 0.0.40
codegen_flags: <defaults>
</compile_context>

<pallas_src>
import math
import functools

import jax
import jax.numpy as jnp
from jax.experimental import pallas as pl
from jax.experimental.pallas import tpu as pltpu


def _make_pe(max_len: int, d_model: int) -> jnp.ndarray:
    """Sinusoidal positional-encoding table, shape (max_len, d_model)."""
    position = jnp.arange(0, max_len, dtype=jnp.float32)[:, None]               # (L, 1)
    div_term = jnp.exp(jnp.arange(0, d_model, 2, dtype=jnp.float32)
                       * (-math.log(10000.0) / d_model))                         # (D/2,)
    pe_even = jnp.sin(position * div_term)                                       # (L, D/2)
    pe_odd = jnp.cos(position * div_term)                                        # (L, D/2)
    # interleave: pe[:, 0::2] = sin, pe[:, 1::2] = cos
    pe = jnp.stack([pe_even, pe_odd], axis=-1).reshape(max_len, d_model)
    return pe


# ------------------------- Pallas kernels -------------------------

def _posenc_eval_kernel(x_ref, pe_ref, o_ref):
    # lane-dense path:  x (tS, D),    pe (tS, D)     -> plain add
    # fallback path:    x (tS, B, D), pe (tS, 1, D)  -> broadcast over batch dim
    o_ref[...] = x_ref[...] + pe_ref[...]


def _posenc_train_kernel(seed_ref, x_ref, pe_ref, o_ref, *, threshold, scale):
    # Inverted dropout: keep with prob (1-p), scale kept values by 1/(1-p).
    # (Matches torch dropout semantics; the RNG stream itself is the TPU HW PRNG.)
    y = x_ref[...] + pe_ref[...]

    # Per-tile seeding so every grid step draws an independent mask.
    pltpu.prng_seed(seed_ref[0], pl.program_id(0), pl.program_id(1))
    bits = pltpu.bitcast(pltpu.prng_random_bits(y.shape), jnp.uint32)
    # Integer-domain compare: P(bits >= threshold) = 1 - p, exact, no f32 convert.
    keep = bits >= jnp.uint32(threshold)
    o_ref[...] = jnp.where(keep, y * scale, jnp.zeros_like(y))


# ------------------------- wrapper -------------------------

def _tile_rows(n_rows: int, row_elems: int, itemsize: int,
               target_bytes: int = 2 * 1024 * 1024) -> int:
    """Rows per block so one block is <= ~2 MiB; multiple of 8 (or full extent)."""
    rows = max(8, target_bytes // max(1, row_elems * itemsize))
    if rows >= n_rows:
        return n_rows
    return max(8, (rows // 8) * 8)


def positional_encoding(x, pe, *, p=0.1, training=False, seed=0):
    """x: (S, B, D); pe: (max_len, D).  Returns x + pe[:S] (with dropout if training)."""
    S, B, D = x.shape
    dtype = x.dtype
    itemsize = jnp.dtype(dtype).itemsize
    pe_slice = pe[:S, :].astype(dtype)        # slicing is glue, stays in JAX

    lane_dense = (D % 128 == 0)
    if lane_dense:
        # View x as (S, B*D) (free, row-major).  Grid column b addresses x[:, b, :]
        # as a (tS, D) block whose last dim is a multiple of 128 -> unmasked stores.
        x_in = x.reshape(S, B * D)
        pe_in = pe_slice                                        # (S, D)
        t_s = _tile_rows(S, D, itemsize)
        grid = (pl.cdiv(S, t_s), B)
        x_block = (t_s, D)
        pe_block = (t_s, D)

        def x_map(i, b, *_):                                    # *_ = scalar-prefetch refs
            return (i, b)

        def pe_map(i, b, *_):                                   # same block across b -> resident
            return (i, 0)
    else:
        # Fallback for D not a multiple of 128: keep 3D blocks with full (B, D)
        # trailing extents (block == array extent on those dims).
        x_in = x
        pe_in = pe_slice[:, None, :]                            # (S, 1, D)
        t_s = _tile_rows(S, B * D, itemsize)
        grid = (pl.cdiv(S, t_s), 1)
        x_block = (t_s, B, D)
        pe_block = (t_s, 1, D)

        def x_map(i, b, *_):
            return (i, 0, 0)

        def pe_map(i, b, *_):
            return (i, 0, 0)

    out_shape = jax.ShapeDtypeStruct(x_in.shape, dtype)
    compiler_params = pltpu.CompilerParams(
        dimension_semantics=("parallel", "parallel"))

    if (not training) or p <= 0.0:
        out = pl.pallas_call(
            _posenc_eval_kernel,
            out_shape=out_shape,
            grid_spec=pltpu.PrefetchScalarGridSpec(
                num_scalar_prefetch=0,
                grid=grid,
                in_specs=[pl.BlockSpec(x_block, x_map),
                          pl.BlockSpec(pe_block, pe_map)],
                out_specs=pl.BlockSpec(x_block, x_map),
            ),
            compiler_params=compiler_params,
        )(x_in, pe_in)
    else:
        assert 0.0 < p < 1.0, "dropout p must be in [0, 1)"
        threshold = min(int(round(p * (2.0 ** 32))), 2 ** 32 - 1)
        scale = 1.0 / (1.0 - p)
        kernel = functools.partial(_posenc_train_kernel,
                                   threshold=threshold, scale=scale)
        seed_arr = jnp.array([seed], dtype=jnp.int32)
        out = pl.pallas_call(
            kernel,
            out_shape=out_shape,
            grid_spec=pltpu.PrefetchScalarGridSpec(
                num_scalar_prefetch=1,                          # seed lands in SMEM
                grid=grid,
                in_specs=[pl.BlockSpec(x_block, x_map),
                          pl.BlockSpec(pe_block, pe_map)],
                out_specs=pl.BlockSpec(x_block, x_map),
            ),
            compiler_params=compiler_params,
        )(seed_arr, x_in, pe_in)

    return out.reshape(S, B, D)


if __name__ == "__main__":
    key = jax.random.PRNGKey(0)

    # Small shapes consistent with the module: seq=8, batch=2, d_model=128
    S, B, D = 8, 2, 128
    max_len = 64   # module default is 5000; the table is just larger

    x = jax.random.normal(key, (S, B, D), dtype=jnp.float32)
    pe = _make_pe(max_len, D)

    # Eval-mode forward (dropout = identity), lane-dense path.
    out = jax.block_until_ready(positional_encoding(x, pe, p=0.1, training=False))
    ref = x + pe[:S][:, None, :]
    assert jnp.allclose(out, ref, atol=1e-5, rtol=1e-5), "mismatch vs reference (lane-dense)"

    # Eval-mode forward on the fallback path (d_model not a multiple of 128).
    D2 = 32
    x2 = jax.random.normal(jax.random.PRNGKey(1), (S, B, D2), dtype=jnp.float32)
    pe2 = _make_pe(max_len, D2)
    out2 = jax.block_until_ready(positional_encoding(x2, pe2, p=0.1, training=False))
    ref2 = x2 + pe2[:S][:, None, :]
    assert jnp.allclose(out2, ref2, atol=1e-5, rtol=1e-5), "mismatch vs reference (fallback)"

    # Training-mode forward uses the TPU hardware PRNG; only exercise it on a real TPU.
    # TODO(synk): torch's dropout RNG stream cannot be reproduced bit-for-bit; only the
    # keep-probability / scaling semantics are matched.
    if jax.devices()[0].platform == "tpu":
        p = 0.1
        out_t = jax.block_until_ready(
            positional_encoding(x, pe, p=p, training=True, seed=1234))
        scale = 1.0 / (1.0 - p)
        kept = out_t != 0
        # Kept elements must equal (x + pe) * scale.
        assert jnp.allclose(jnp.where(kept, out_t, 0.0),
                            jnp.where(kept, ref * scale, 0.0),
                            atol=1e-4, rtol=1e-4), "train path kept-value mismatch"
        # Drop fraction should be ~p (loose bound; catches signed-bits bugs).
        drop_frac = float(jnp.mean((out_t == 0).astype(jnp.float32)))
        assert drop_frac < 0.3, f"drop fraction {drop_frac} far from p={p}"

    print("KERNEL_OK")
</pallas_src>

<mosaic_0001>
module attributes {stable_mosaic.version = 11 : i64} {
  func.func @_posenc_eval_kernel(%arg0: i32, %arg1: i32, %arg2: memref<8x128xf32, #tpu.memory_space<vmem>>, %arg3: memref<8x128xf32, #tpu.memory_space<vmem>>, %arg4: memref<8x128xf32, #tpu.memory_space<vmem>>) attributes {dimension_semantics = [#tpu.dimension_semantics<parallel>, #tpu.dimension_semantics<parallel>], iteration_bounds = array<i64: 1, 2>, scalar_prefetch = 0 : i64, scratch_operands = 0 : i64, tpu.core_type = #tpu.core_type<tc>, window_params = [{transform_indices = @transform_0, window_bounds = array<i64: 8, 128>}, {transform_indices = @transform_1, window_bounds = array<i64: 8, 128>}, {transform_indices = @transform_2, window_bounds = array<i64: 8, 128>}]} {
    %c0 = arith.constant 0 : index
    %c0_0 = arith.constant 0 : index
    %0 = vector.load %arg2[%c0, %c0_0] : memref<8x128xf32, #tpu.memory_space<vmem>>, vector<8x128xf32>
    %c0_1 = arith.constant 0 : index
    %c0_2 = arith.constant 0 : index
    %1 = vector.load %arg3[%c0_1, %c0_2] : memref<8x128xf32, #tpu.memory_space<vmem>>, vector<8x128xf32>
    %2 = arith.addf %0, %1 : vector<8x128xf32>
    %c0_3 = arith.constant 0 : index
    %c0_4 = arith.constant 0 : index
    %3 = vector.load %arg4[%c0_3, %c0_4] : memref<8x128xf32, #tpu.memory_space<vmem>>, vector<8x128xf32>
    tpu.vector_store %arg4[%c0_3, %c0_4], %2 {strides = array<i32>} : memref<8x128xf32, #tpu.memory_space<vmem>>, vector<8x128xf32>,
    return
  }
  func.func @transform_0(%arg0: i32, %arg1: i32) -> (i32, i32) {
    %c0_i32 = arith.constant 0 : i32
    return %arg0, %arg1 : i32, i32
  }
  func.func @transform_1(%arg0: i32, %arg1: i32) -> (i32, i32) {
    %c0_i32 = arith.constant 0 : i32
    %c0_i32_0 = arith.constant 0 : i32
    return %arg0, %c0_i32 : i32, i32
  }
  func.func @transform_2(%arg0: i32, %arg1: i32) -> (i32, i32) {
    %c0_i32 = arith.constant 0 : i32
    return %arg0, %arg1 : i32, i32
  }
}

</mosaic_0001>

<bundles_post_ra>
// kernel: tpu_custom_call.1
= control target key start
LH: loop header
LB: loop body
LE: loop exit
PB: predicated region body
PF: predicated region fallthrough
CT: control target
= control target key end

     0   :  { %7 = vsyncpa [#allocation3], 0  ;;  %s779_s0 = inlined_call_operand.hbm [shape: f32[8,256], index: 0, kind: input, shape index: {}]   ;;  %s780_s1 = inlined_call_operand.hbm [shape: f32[8,128], index: 1, kind: input, shape index: {}]   ;;  %s781_s2 = inlined_call_operand.hbm [shape: f32[8,256], index: 2, kind: output, shape index: {}]  }
   0x1   :  { %9 = vsyncpa [#allocation3 + $0x1], 0 }
   0x2   :  { %10 = vsyncpa [#allocation6], 0 }
   0x3   :  { %11 = vsyncpa [#allocation4], 0 }
   0x4   :  { %13 = vsyncpa [#allocation4 + $0x1], 0  ;;  %s563_s9 = smov 0   ;;  %s565_s10 = smov 0  }
   0x5   :  { %s567_s11 = smov 0   ;;  %s569_s12 = smov 0  }
   0x6   :  { %s571_s13 = smov 0   ;;  %s573_s14 = smov 0  }
   0x7 LB: > { %s311_s15 = sadd.s32 4294967295, %s543_s14   ;;  %s312_s16 = sadd.s32 4294967294, %s543_s14   ;;  %s543_s14 = sphi %s573_s14, %s19_s14   ;;  %s539_s13 = sphi %s571_s13, %s806_s13   ;;  %s535_s12 = sphi %s569_s12, %s805_s12   ;;  %s531_s11 = sphi %s567_s11, %s804_s11   ;;  %s527_s10 = sphi %s565_s10, %s803_s10   ;;  %s523_s9 = sphi %s563_s9, %s802_s9  }
   0x8   : > { %p53_p0 = scmp.ne.s32.totalorder %s527_s10, %s523_s9  ;;  %p597_p1 = scmp.eq.s32.totalorder %s311_s15, 0 }
   0x9   : > { %p601_p2 = scmp.eq.s32.totalorder %s311_s15, 1  ;;  %p111_p3 = scmp.eq.s32.totalorder %s312_s16, 1 }
   0xa   : > { %s786_s17 = scalar_select %p597_p1, 1, 0 }
   0xb   : > { %s787_s18 = scalar_select %p601_p2, 1, 0 }
   0xc   : > { %p607_p4 = por %p597_p1, %p53_p0  ;;  %p313_p5 = scmp.ge.s32.totalorder %s543_s14, 1 }
   0xd   : > { %p612_p6 = por %p111_p3, %p53_p0  ;;  %p118_p7 = scmp.lt.s32.totalorder %s543_s14, 3 }
   0xe   : > { %s788_s19 = scalar_select %p607_p4, 1, 0 }
   0xf   : > { %s789_s20 = scalar_select %p612_p6, 1, 0 }
  0x10   : > { %p617_p8 = pnand %p313_p5, %p118_p7  ;;  %s545_s22 = smov [#allocation5]  }
  0x11   : > { %s133_s23 = sshll.u32 %s545_s22, 4  ;;  %s28_s25 = sadd.s32 1, %s539_s13  ;;  %s134_s23 = int_to_ptr.vmem [resolvable:$true] %s133_s23 }
  0x12   : > { %s790_s21 = scalar_select %p617_p8, 1, 0 }
  0x13   : > { %p334_p10 = pneg %p617_p8  ;;  %s40_s26 = sadd.s32 1, %s531_s11 }
  0x14   : > { %p632_p12 = scmp.ge.s32.totalorder %s28_s25, 2  ;;  %s399_s30 = scalar_lea.hbm %s780_s1, 128 }
  0x15   : > { %p626_p11 = pnand %p334_p10, %p597_p1  ;;  %p400_p13 = scmp.ne.s32.totalorder %s780_s1, %s399_s30 }
  0x16   : > { %s792_s27 = scalar_select %p632_p12, 1, 0 }
  0x17   : > { %p401_p0 = pneg %p626_p11  ;;  %p406_p7 = scmp.lt.u32.totalorder %s399_s30, %s780_s1 }
  0x19   : > { %p402_p3 = pnand %p401_p0, %p400_p13 }
  0x1b   : > { %p403_p5 = pneg %p402_p3 }
  0x1d   : > { %p408_p10 = pnand %p406_p7, %p403_p5 }
  0x1f   : > { %411 = shalt.err (!%p408_p10)
}
  0x20   : > { %s412_s7 = scalar_lea.vmem %s134_s23, 128  ;;  %p420_p4 = scmp.lt.s32.totalorder %s134_s23, %s134_s23 }
  0x21   : > { %p413_p9 = scmp.ne.s32.totalorder %s134_s23, %s412_s7  ;;  %p421_p8 = scmp.lt.s32.totalorder %s412_s7, %s412_s7 }
  0x23   : > { %p415_p6 = pnand %p413_p9, %p401_p0  ;;  %p422_p2 = por %p421_p8, %p420_p4 }
  0x25   : > { %p416_p1 = pneg %p415_p6 }
  0x27   : > { %p423_p12 = pnand %p422_p2, %p416_p1 }
  0x29   : > { %426 = shalt.err (!%p423_p12)
}
  0x2a   : > { %337 = dma.hbm_to_vmem [thread:$0]  (!%p626_p11), %s780_s1, 128, %s134_s23, [#allocation6]  }
  0x2b   : > { %p793_p4 = scmp.ne.s32.totalorder %s792_s27, 0  ;;  %p47_p1 = scmp.ne.s32.totalorder %s531_s11, %s527_s10 }
  0x2c   : > { %p48_p2 = scmp.eq.s32.totalorder %s543_s14, 0  ;;  %p347_p6 = scmp.lt.s32.totalorder %s543_s14, 2 }
  0x2d   : > { %s808_s25 = smov (%p793_p4, %s28_s25), 0  ;;  %p794_p12 = scmp.ne.s32.totalorder %s787_s18, 0 }
  0x2e   : > { %s36_s16 = ssub.s32 %s539_s13, %s808_s25  ;;  %p49_p9 = por %p48_p2, %p47_p1 }
  0x2f   : > { %p38_p8 = scmp.eq.s32.totalorder %s36_s16, 0  ;;  %p664_p13 = por %p794_p12, %p47_p1 }
  0x30   : > { %s144_s24 = sand.u32 1, %s531_s11   ;;  %s317_s27 = sshll.u32 %s539_s13, 7 }
  0x31   : > { %s672_s28 = scalar_select %p38_p8, %s531_s11, %s40_s26  }
  0x32   : > { %s316_s23 = sshll.u32 %s144_s24, 3  ;;  %s678_s3 = scalar_lea.hbm %s779_s0, %s317_s27 }
  0x33   : > { %s148_s18 = scalar_lea.vmem [#allocation2], %s316_s23  ;;  %p682_p11 = pnand %p347_p6, %p49_p9 }
  0x34   : > { %s157_s4 = sshll.u32 %s148_s18, 4  ;;  %s145_s26 = scalar_lea.sflag [#allocation3], %s144_s24  ;;  %s680_s4 = int_to_ptr.vmem [resolvable:$true] %s157_s4 }
  0x35   : > { %s427_s6 = scalar_lea.hbm %s678_s3, 128  ;;  %p429_p3 = pneg %p682_p11 }
  0x36   : > { %p428_p0 = scmp.ne.s32.totalorder %s678_s3, %s427_s6  ;;  %s432_s15 = scalar_lea.hbm %s779_s0, 256 }
  0x37   : > { %p433_p10 = scmp.lt.u32.totalorder %s678_s3, %s779_s0  ;;  %p434_p4 = scmp.lt.u32.totalorder %s432_s15, %s427_s6 }
  0x38   : > { %p430_p5 = pnand %p429_p3, %p428_p0  ;;  %p436_p2 = scmp.lt.u32.totalorder %s427_s6, %s678_s3 }
  0x39   : > { %p435_p1 = por %p434_p4, %p433_p10 }
  0x3a   : > { %p431_p7 = pneg %p430_p5 }
  0x3b   : > { %p437_p6 = por %p436_p2, %p435_p1 }
  0x3d   : > { %p438_p8 = pnand %p437_p6, %p431_p7 }
  0x3f   : > { %441 = shalt.err (!%p438_p8)
}
  0x40   : > { %s442_s24 = scalar_lea.vmem %s680_s4, 128  ;;  %s546_s27 = smov [#allocation2]  }
  0x41   : > { %p443_p9 = scmp.ne.s32.totalorder %s680_s4, %s442_s24  ;;  %s447_s29 = sshll.u32 %s546_s27, 4  ;;  %s448_s29 = int_to_ptr.vmem [resolvable:$false] %s447_s29 }
  0x42   : > { %s449_s30 = scalar_lea.vmem %s448_s29, 256  ;;  %p450_p5 = scmp.lt.s32.totalorder %s680_s4, %s448_s29 }
  0x43   : > { %p445_p12 = pnand %p443_p9, %p429_p3  ;;  %p451_p10 = scmp.lt.s32.totalorder %s449_s30, %s442_s24 }
  0x45   : > { %p446_p0 = pneg %p445_p12  ;;  %p452_p4 = por %p451_p10, %p450_p5 }
  0x47   : > { %p453_p1 = pnand %p452_p4, %p446_p0 }
  0x49   : > { %456 = shalt.err (!%p453_p1)
}
  0x4a   : > { %341 = dma.hbm_to_vmem [thread:$0]  (!%p682_p11), %s678_s3, 128, %s680_s4, %s145_s26  }
  0x4b   : > { %p797_p7 = scmp.ne.s32.totalorder %s790_s21, 0 }
  0x4c   : > { %s714_s18 = sand.u32 (!%p797_p7), 1, %s527_s10   ;;  %p798_p3 = scmp.ne.s32.totalorder (!%p797_p7), %s788_s19, 0 }
  0x4d   : > { %166 = sbr.rel (%p797_p7) target bundleno = 113 (0x71), region = 28  ;;  %s319_s6 = sshll.u32 (!%p797_p7), %s714_s18, 3 }
  0x4e   : > { %s169_s7 = scalar_lea.sflag (!%p797_p7), [#allocation3], %s714_s18  ;;  %s172_s8 = scalar_lea.vmem (!%p797_p7), [#allocation2], %s319_s6 }
  0x54   : > { %510 = dma.done.wait (%p798_p3), %s169_s7, 128  }
  0x55   : > { %512 = vsyncadd (%p798_p3), %s169_s7, 4294967168  ;;  %p799_p2 = scmp.ne.s32.totalorder %s786_s17, 0 }
  0x57   : > { %514 = dma.done.wait (%p799_p2), [#allocation6], 128  }
  0x58   : > { %516 = vsyncadd (%p799_p2), [#allocation6], 4294967168  ;;  %s196_s21 = scalar_lea.vmem [#allocation7], %s319_s6  ;;  %s323_s4 = sshll.u32 %s535_s12, 7  ;;  %v197_v0 = vld [vmem:[%s172_s8] sm:$0xff]  ;;  %v198_v1 = vld [vmem:[#allocation5] sm:$0xff] }
  0x59   : > { %s217_s3 = sshll.u32 %s196_s21, 4  ;;  %v199_v2 = vadd.f32 %v198_v1, %v197_v0  ;;  %s732_s26 = scalar_lea.hbm %s781_s2, %s323_s4  ;;  %s727_s3 = int_to_ptr.vmem [resolvable:$true] %s217_s3 }
  0x5a   : > { %s202_s17 = scalar_lea.sflag [#allocation4], %s714_s18  ;;  %s457_s15 = scalar_lea.vmem %s727_s3, 128 }
  0x5b   : > { %200 = vst [vmem:[%s196_s21] sm:$0xff] %v199_v2  ;;  %p458_p11 = scmp.ne.s32.totalorder %s727_s3, %s457_s15  ;;  %s547_s12 = smov [#allocation7]  }
  0x5c   : > { %s461_s16 = sshll.u32 %s547_s12, 4  ;;  %s462_s16 = int_to_ptr.vmem [resolvable:$false] %s461_s16 }
  0x5d   : > { %p459_p6 = pnand %p458_p11, %p664_p13  ;;  %s463_s23 = scalar_lea.vmem %s462_s16, 256 }
  0x5e   : > { %p464_p9 = scmp.lt.s32.totalorder %s727_s3, %s462_s16  ;;  %p465_p12 = scmp.lt.s32.totalorder %s463_s23, %s457_s15 }
  0x5f   : > { %p460_p8 = pneg %p459_p6 }
  0x60   : > { %p466_p0 = por %p465_p12, %p464_p9 }
  0x62   : > { %p467_p5 = pnand %p466_p0, %p460_p8 }
  0x64   : > { %470 = shalt.err (!%p467_p5)
}
  0x65   : > { %s471_s24 = scalar_lea.hbm %s732_s26, 128  ;;  %s475_s30 = scalar_lea.hbm %s781_s2, 256 }
  0x66   : > { %p472_p10 = scmp.ne.s32.totalorder %s732_s26, %s471_s24  ;;  %p476_p7 = scmp.lt.u32.totalorder %s732_s26, %s781_s2 }
  0x67   : > { %p477_p3 = scmp.lt.u32.totalorder %s475_s30, %s471_s24  ;;  %p479_p11 = scmp.lt.u32.totalorder %s471_s24, %s732_s26 }
  0x68   : > { %p473_p4 = pnand %p472_p10, %p664_p13 }
  0x69   : > { %p478_p2 = por %p477_p3, %p476_p7 }
  0x6a   : > { %p474_p1 = pneg %p473_p4 }
  0x6b   : > { %p480_p6 = por %p479_p11, %p478_p2 }
  0x6d   : > { %p481_p8 = pnand %p480_p6, %p474_p1 }
  0x6f   : > { %484 = shalt.err (!%p481_p8)
}
  0x70   : > { %332 = dma.vmem_to_hbm [thread:$0]  (%p664_p13), %s727_s3, 128, %s732_s26, %s202_s17  }
  0x71 PF: > { %s229_s7 = sand.u32 1, %s523_s9   ;;  %p800_p9 = scmp.ne.s32.totalorder %s789_s20, 0 }
  0x72   : > { %p801_p12 = scmp.ge.s32.totalorder %s543_s14, 2  ;;  %s230_s8 = scalar_lea.sflag [#allocation4], %s229_s7 }
  0x74   : > { %p343_p0 = pnand %p801_p12, %p800_p9 }
  0x76   : > { %518 = dma.done.wait (!%p343_p0), %s230_s8, 128  }
  0x77   : > { %520 = vsyncadd (!%p343_p0), %s230_s8, 4294967168  ;;  %s19_s14 = sadd.s32 1, %s543_s14   ;;  %s802_s9 = smov %s527_s10 }
  0x78   : > { %p16_p5 = scmp.ge.s32.totalorder %s19_s14, 4   ;;  %s803_s10 = smov %s531_s11 }
  0x79   : > { %s804_s11 = smov %s672_s28  ;;  %s805_s12 = smov %s539_s13 }
  0x7a   : > { %s806_s13 = smov %s808_s25  ;;  %18 = sbr.rel (!%p16_p5) target bundleno = 7 (0x7), region = 78 }
  0x81   :  { %235 = vsyncpa [#allocation3], 1 }
  0x82   :  { %237 = vsyncpa [#allocation3 + $0x1], 1 }
  0x83   :  { %238 = vsyncpa [#allocation6], 1 }
  0x84   :  { %239 = vsyncpa [#allocation4], 1 }
  0x85   :  { %241 = vsyncpa [#allocation4 + $0x1], 1 }

</bundles_post_ra>
